<compile_context>
chip_gen: v6e
topology: v6e:2x2x1
jax: 0.10.0
libtpu: 0.0.40
codegen_flags: <defaults>
</compile_context>

<pallas_src>
import numpy as np
import jax
import jax.numpy as jnp
from jax import lax
from jax.experimental import pallas as pl
from jax.experimental.pallas import tpu as pltpu


_VMEM_PIPELINE_BUDGET = 24 * 1024 * 1024   # bytes for the double-buffered blocks
_VMEM_LIMIT_BYTES = 48 * 1024 * 1024       # scoped VMEM limit (ok on v5e/v6e/v7x)


def _one_hot_packed_kernel(xT_ref, sel_ref, cls_ref, o_ref):
    """k > 1 path (C <= 64): lane-packed output, MXU used as a free per-lane gather.

    xT_ref : (k, TR) int32   lane-dense transposed packed indices
    sel_ref: (k, W)  float32 sel[j, l] = 1.0 iff l // C == j   (resident constant)
    cls_ref: (1, W)  float32 cls[0, l] = l % C                 (resident constant)
    o_ref  : (TR, W) float32
    """
    idx_f = xT_ref[...].astype(jnp.float32)                       # (k, TR)
    # expected[r, l] = idx[r, l // C]; exact on the MXU: index values < 64 are
    # exact in bf16 and each (r, l) sum has exactly one nonzero term.
    expected = lax.dot_general(
        idx_f, sel_ref[...],
        dimension_numbers=(((0,), (0,)), ((), ())),               # contract k
        preferred_element_type=jnp.float32)                       # (TR, W)
    o_ref[...] = (expected == cls_ref[...]).astype(jnp.float32)


def _one_hot_wide_kernel(x_ref, o_ref):
    """k == 1 path (C >= 65): integer broadcast-compare, exact for any C.

    x_ref: (TR, 1) int32;  o_ref: (TR, C) float32
    """
    C = o_ref.shape[-1]
    lane = lax.broadcasted_iota(jnp.int32, (1, C), 1)
    o_ref[...] = (x_ref[...] == lane).astype(jnp.float32)


def one_hot_encoding(x, num_categories, *, tile_rows=None):
    """Pallas equivalent of OneHotEncoding.forward: one_hot(x, C).float()."""
    C = int(num_categories)
    orig_shape = tuple(x.shape)
    N = int(np.prod(orig_shape)) if orig_shape else 1
    if N == 0:
        return jnp.zeros((*orig_shape, C), jnp.float32)

    x_flat = jnp.reshape(x, (N,)).astype(jnp.int32)

    # Lane packing: largest k <= 128//C that divides N exactly, so the packed
    # (R, W=k*C) output reshapes back to (N, C) metadata-only (no pad / slice).
    k_cap = max(1, 128 // C)
    k = max(d for d in range(1, k_cap + 1) if N % d == 0)
    # TODO(synk): for divisor-poor N (e.g. prime) with small C this degrades to
    # k == 1 (narrow masked stores); a main+tail split via input_output_aliases
    # would keep full-lane stores without re-slicing the whole output.

    if k > 1:
        W = k * C
        R = N // k
        pad_k = -(-k // 8) * 8                      # sublane padding of (k, TR) block
        bytes_per_row = 4 * (W + pad_k)             # output + input bytes per packed row
        tr = (_VMEM_PIPELINE_BUDGET // (2 * bytes_per_row)
              if tile_rows is None else int(tile_rows))
        if tr >= R:
            TR = R                                  # single block == full array dims
        else:
            TR = min(max(128, (tr // 128) * 128), R)   # lane-dim multiple of 128
        grid = (pl.cdiv(R, TR),)

        # Lane-dense transposed indices (cheap: N * 4 bytes).
        xT = jnp.transpose(x_flat.reshape(R, k))    # (k, R)

        # Host-side constants, kept resident in VMEM across grid steps.
        lane = np.arange(W)
        sel = (np.arange(k)[:, None] == (lane // C)[None, :]).astype(np.float32)
        cls = (lane % C).astype(np.float32)[None, :]

        out = pl.pallas_call(
            _one_hot_packed_kernel,
            out_shape=jax.ShapeDtypeStruct((R, W), jnp.float32),
            grid=grid,
            in_specs=[
                pl.BlockSpec((k, TR), lambda i: (0, i)),
                pl.BlockSpec((k, W), lambda i: (0, 0)),    # resident constant
                pl.BlockSpec((1, W), lambda i: (0, 0)),    # resident constant
            ],
            out_specs=pl.BlockSpec((TR, W), lambda i: (i, 0)),
            compiler_params=pltpu.CompilerParams(
                dimension_semantics=("parallel",),
                vmem_limit_bytes=_VMEM_LIMIT_BYTES,
            ),
        )(xT, jnp.asarray(sel), jnp.asarray(cls))
        out = out.reshape(N, C)                     # metadata-only reshape
    else:
        # Wide path: one index row per output row, integer compare.
        R = N
        # (TR, 1) int32 input block lane-pads to 128 lanes in VMEM -> budget it.
        bytes_per_row = 4 * (C + 128)
        tr = (_VMEM_PIPELINE_BUDGET // (2 * bytes_per_row)
              if tile_rows is None else int(tile_rows))
        if tr >= R:
            TR = R
        else:
            TR = min(max(8, (tr // 8) * 8), R)
        grid = (pl.cdiv(R, TR),)

        out = pl.pallas_call(
            _one_hot_wide_kernel,
            out_shape=jax.ShapeDtypeStruct((N, C), jnp.float32),
            grid=grid,
            in_specs=[pl.BlockSpec((TR, 1), lambda i: (i, 0))],
            out_specs=pl.BlockSpec((TR, C), lambda i: (i, 0)),
            compiler_params=pltpu.CompilerParams(
                dimension_semantics=("parallel",),
                vmem_limit_bytes=_VMEM_LIMIT_BYTES,
            ),
        )(x_flat.reshape(N, 1))

    return out.reshape(*orig_shape, C)


if __name__ == "__main__":
    key = jax.random.PRNGKey(0)

    # Case 1: C=16, small shape, single block, fully lane-dense (W=128).
    C1 = 16
    x1 = jax.random.randint(key, (2, 8), 0, C1, dtype=jnp.int32)
    out1 = jax.block_until_ready(one_hot_encoding(x1, C1))
    ref1 = jax.nn.one_hot(x1, C1, dtype=jnp.float32)
    assert out1.shape == (2, 8, C1)
    assert out1.dtype == jnp.float32
    assert jnp.array_equal(out1, ref1)

    # Case 2: multi-step grid (tile_rows forces several row blocks).
    x2 = jax.random.randint(jax.random.fold_in(key, 1), (32, 64), 0, C1,
                            dtype=jnp.int32)
    out2 = jax.block_until_ready(one_hot_encoding(x2, C1, tile_rows=128))
    ref2 = jax.nn.one_hot(x2, C1, dtype=jnp.float32)
    assert jnp.array_equal(out2, ref2)

    # Case 3: C=10 (doesn't divide 128), N=21 (largest divisor <= 12 is 7):
    # k=7, W=70 -> masked tail lanes but no wrapper-side pad/slice of output.
    x3 = jax.random.randint(jax.random.fold_in(key, 2), (3, 7), 0, 10,
                            dtype=jnp.int32)
    out3 = jax.block_until_ready(one_hot_encoding(x3, 10))
    ref3 = jax.nn.one_hot(x3, 10, dtype=jnp.float32)
    assert jnp.array_equal(out3, ref3)

    # Case 4: large C (k == 1 integer-compare path; exact even for C > 256).
    C4 = 300
    x4 = jax.random.randint(jax.random.fold_in(key, 3), (2, 5), 0, C4,
                            dtype=jnp.int32)
    out4 = jax.block_until_ready(one_hot_encoding(x4, C4))
    ref4 = jax.nn.one_hot(x4, C4, dtype=jnp.float32)
    assert jnp.array_equal(out4, ref4)

    print("KERNEL_OK")
</pallas_src>

<mosaic_0001>
module attributes {stable_mosaic.version = 11 : i64} {
  func.func @_one_hot_packed_kernel(%arg0: i32, %arg1: memref<8x2xi32, #tpu.memory_space<vmem>>, %arg2: memref<8x128xf32, #tpu.memory_space<vmem>>, %arg3: memref<1x128xf32, #tpu.memory_space<vmem>>, %arg4: memref<2x128xf32, #tpu.memory_space<vmem>>) attributes {dimension_semantics = [#tpu.dimension_semantics<parallel>], iteration_bounds = array<i64: 1>, scalar_prefetch = 0 : i64, scratch_operands = 0 : i64, tpu.core_type = #tpu.core_type<tc>, window_params = [{transform_indices = @transform_0, window_bounds = array<i64: 8, 2>}, {pipeline_mode = #tpu.pipeline_mode<synchronous>, transform_indices = @transform_1, window_bounds = array<i64: 8, 128>}, {pipeline_mode = #tpu.pipeline_mode<synchronous>, transform_indices = @transform_2, window_bounds = array<i64: 1, 128>}, {transform_indices = @transform_3, window_bounds = array<i64: 2, 128>}]} {
    %c0 = arith.constant 0 : index
    %c0_0 = arith.constant 0 : index
    %0 = vector.load %arg1[%c0, %c0_0] : memref<8x2xi32, #tpu.memory_space<vmem>>, vector<8x2xi32>
    %1 = arith.sitofp %0 : vector<8x2xi32> to vector<8x2xf32>
    %c0_1 = arith.constant 0 : index
    %c0_2 = arith.constant 0 : index
    %2 = vector.load %arg2[%c0_1, %c0_2] : memref<8x128xf32, #tpu.memory_space<vmem>>, vector<8x128xf32>
    %cst = arith.constant dense<0.000000e+00> : vector<2x128xf32>
    %3 = tpu.matmul %1, %2, %cst {dimension_numbers = #tpu.dot_dimension_numbers<[0], [0], [1], [1], [0, 1, 1, 1], [], []>} : vector<8x2xf32>, vector<8x128xf32>, vector<2x128xf32> -> vector<2x128xf32>
    %c0_3 = arith.constant 0 : index
    %c0_4 = arith.constant 0 : index
    %4 = vector.load %arg3[%c0_3, %c0_4] : memref<1x128xf32, #tpu.memory_space<vmem>>, vector<1x128xf32>
    %5 = vector.broadcast %4 : vector<1x128xf32> to vector<2x128xf32>
    %6 = arith.cmpf oeq, %3, %5 : vector<2x128xf32>
    %7 = arith.extui %6 : vector<2x128xi1> to vector<2x128xi32>
    %8 = arith.sitofp %7 : vector<2x128xi32> to vector<2x128xf32>
    %c0_5 = arith.constant 0 : index
    %c0_6 = arith.constant 0 : index
    %9 = vector.load %arg4[%c0_5, %c0_6] : memref<2x128xf32, #tpu.memory_space<vmem>>, vector<2x128xf32>
    tpu.vector_store %arg4[%c0_5, %c0_6], %8 {strides = array<i32>} : memref<2x128xf32, #tpu.memory_space<vmem>>, vector<2x128xf32>,
    return
  }
  func.func @transform_0(%arg0: i32) -> (i32, i32) {
    %c0_i32 = arith.constant 0 : i32
    %c0_i32_0 = arith.constant 0 : i32
    return %c0_i32, %arg0 : i32, i32
  }
  func.func @transform_1(%arg0: i32) -> (i32, i32) {
    %c0_i32 = arith.constant 0 : i32
    %c0_i32_0 = arith.constant 0 : i32
    %c0_i32_1 = arith.constant 0 : i32
    return %c0_i32, %c0_i32_0 : i32, i32
  }
  func.func @transform_2(%arg0: i32) -> (i32, i32) {
    %c0_i32 = arith.constant 0 : i32
    %c0_i32_0 = arith.constant 0 : i32
    %c0_i32_1 = arith.constant 0 : i32
    return %c0_i32, %c0_i32_0 : i32, i32
  }
  func.func @transform_3(%arg0: i32) -> (i32, i32) {
    %c0_i32 = arith.constant 0 : i32
    %c0_i32_0 = arith.constant 0 : i32
    return %arg0, %c0_i32 : i32, i32
  }
}

</mosaic_0001>

<bundles_post_ra>
// kernel: tpu_custom_call.1
= control target key start
LH: loop header
LB: loop body
LE: loop exit
PB: predicated region body
PF: predicated region fallthrough
CT: control target
= control target key end

     0   :  { %v184_v3 = vmov 0.0   ;;  %vm185_vm0 = vmmov 0   ;;  %s219_s0 = inlined_call_operand.vmem [shape: s32[8,2], index: 0, kind: input, shape index: {}]   ;;  %s220_s1 = inlined_call_operand.vmem [shape: f32[8,128], index: 1, kind: input, shape index: {}]   ;;  %s221_s2 = inlined_call_operand.vmem [shape: f32[1,128], index: 2, kind: input, shape index: {}]   ;;  %s222_s3 = inlined_call_operand.hbm [shape: f32[2,128], index: 3, kind: output, shape index: {}]  }
   0x1   :  { %v15_v0 = vld [vmem:[%s219_s0] sm:$0xff]  ;;  %154 = vmatprep.subr.mxu0 %v184_v3  ;;  %156 = vmatprep.mubr.msk.f32.mxu0 %vm185_vm0, %v184_v3 }
   0x2   :  { %v17_v1 = vld [vmem:[%s220_s1] sm:$0xff]  ;;  %v16_v2 = vcvt.s32.f32 %v15_v0 }
   0x3   :  { %8 = vsyncpa [#allocation3], 0  ;;  %155 = vmatpush3.msra.mxu0 %v17_v1  ;;  %vm50_vm1 = vcmask 64512   ;;  %v150_v5 = vld [vmem:[%s221_s2] ss:$0 sm:$0xff]  ;;  %s186_s0 = smov [#allocation2]  }
   0x4   :  { %18 = vxpose.xlu0.b32.start.end [1/1] (short) (narrow) %v16_v2, 8  ;;  %s141_s18 = sshll.u32 %s186_s0, 4  ;;  %s142_s18 = int_to_ptr.vmem [resolvable:$true] %s141_s18 }
   0x5   :  { %s162_s1 = scalar_lea.vmem %s142_s18, 32  ;;  %p167_p1 = scmp.lt.s32.totalorder %s142_s18, %s142_s18 }
   0x6   :  { %p163_p0 = scmp.ne.s32.totalorder %s142_s18, %s162_s1  ;;  %p168_p2 = scmp.lt.s32.totalorder %s162_s1, %s162_s1 }
   0x8   :  { %p169_p3 = por %p168_p2, %p167_p1 }
   0xa   :  { %p170_p4 = pnand %p169_p3, %p163_p0 }
  0x80   :  { %v34_v4 = vpop.trf.xlu0 }
  0x81   :  { %157 = vmatmul.mubr.msk.f32.vlgmr.msra.gmra.mxu0 %vm50_vm1, %v34_v4 }
 0x141   :  { %v120_v6 = vpop.f32.mrf.mxu0 }
 0x142   :  { %vm131_vm2 = vcmp.eq.f32.partialorder %v120_v6, %v150_v5 }
 0x143   :  { %v151_v7 = vsel %vm131_vm2, 1.0, %v184_v3  ;;  %v158_v8 = vpop.f32.mrf.mxu0 }
 0x144   :  { %134 = vst [vmem:[#allocation2] sm:$0x3] %v151_v7 }
 0x145   :  { %173 = shalt.err (!%p170_p4)
}
 0x146   :  { %144 = dma.vmem_to_hbm [thread:$0]  %s142_s18, 32, %s222_s3, [#allocation3]  }
 0x147   :  { %182 = dma.done.wait [#allocation3], 32  }
 0x148   :  { %183 = vsyncadd [#allocation3], 4294967264 }
 0x149   :  { %148 = vsyncpa [#allocation3], 1 }

</bundles_post_ra>
